<compile_context>
chip_gen: v5e
topology: v5e:2x2
jax: 0.10.0
libtpu: 0.0.40
codegen_flags: <defaults>
</compile_context>

<pallas_src>
import functools

import jax
import jax.numpy as jnp
from jax.experimental import pallas as pl
from jax.experimental.pallas import tpu as pltpu


# ----------------------------------------------------------------------------
# Stage 1: per-block BN batch statistics (sum and sum-of-squares, "parallel").
# ----------------------------------------------------------------------------
def bn_stats_kernel(x_ref, sum_ref, sumsq_ref, *, NB):
    """x_ref: (NB, C_pad, HW) block; writes this block's per-channel sum / sumsq."""
    s = None
    ss = None
    for n in range(NB):                                   # static unroll
        xn = x_ref[n]                                     # (C_pad, HW), lanes = spatial
        sn = jnp.sum(xn, axis=1, keepdims=True)           # (C_pad, 1)
        ssn = jnp.sum(xn * xn, axis=1, keepdims=True)
        s = sn if s is None else s + sn
        ss = ssn if ss is None else ss + ssn
    sum_ref[...] = s
    sumsq_ref[...] = ss


# ----------------------------------------------------------------------------
# Stage 2: fused scale/shift (folded BN) -> ReLU -> im2col (roll+mask) -> matmul.
# ----------------------------------------------------------------------------
def bn_relu_conv_kernel(masks_ref, scale_ref, shift_ref, w_ref, b_ref, x_ref,
                        out_ref, *, NB, HW, tap_shifts, compute_dtype):
    """
    masks_ref: (n_taps, HW)            precomputed 0/1 boundary masks (resident)
    scale_ref: (C_pad, 1)              gamma * rsqrt(var + eps)        (resident)
    shift_ref: (C_pad, 1)              beta - mean * scale             (resident)
    w_ref:     (C_out_pad, n_taps*C_pad)  tap-major / channel-minor    (resident)
    b_ref:     (C_out_pad, 1)                                          (resident)
    x_ref:     (NB, C_pad, HW)         batch block, spatial on lanes
    out_ref:   (NB, C_out_pad, HW)     lane-dense output block
    """
    scale = scale_ref[...]
    shift = shift_ref[...]
    w = w_ref[...]
    bias = b_ref[...]

    for n in range(NB):                                   # static unroll over batch
        # Fused BN (folded scale/shift) + ReLU, one elementwise pass in f32.
        y = jnp.maximum(x_ref[n] * scale + shift, 0.0)    # (C_pad, HW)
        # Early cast: taps/patches live in the MXU dtype (bf16 halves footprint).
        y = y.astype(compute_dtype)

        # Build the im2col patch matrix with lane rotations + resident masks.
        taps = []
        for t, d in enumerate(tap_shifts):
            if d % HW == 0:
                rolled = y
            else:
                # rolled[:, s] = y[:, (s + d) mod HW]   (wrap lanes get masked to 0)
                rolled = pltpu.roll(y, shift=(-d) % HW, axis=1)
            taps.append(rolled * masks_ref[t:t + 1, :])   # (C_pad, HW)
        # C_pad is a multiple of the sublane packing -> tile-aligned concat.
        patches = jnp.concatenate(taps, axis=0)           # (n_taps*C_pad, HW)

        # Single MXU matmul, K = n_taps*C_pad, lane-wide N = HW, f32 accumulation.
        acc = jnp.dot(w, patches, preferred_element_type=jnp.float32)
        out_ref[n] = (acc + bias).astype(out_ref.dtype)   # lane-dense store


# ----------------------------------------------------------------------------
# Batch-block heuristic: amortize per-step overhead, keep >=2 (prefer >=4) grid
# steps for megacore, and keep the per-step working set modest.
# ----------------------------------------------------------------------------
def _pick_batch_block(N, C_pad, C_out_pad, HW, n_taps, compute_itemsize,
                      budget_bytes=6 * 1024 * 1024):
    best = 1
    for d in range(1, min(N, 8) + 1):
        if N % d:
            continue
        steps = N // d
        if N >= 4 and steps < 4:
            continue
        if N >= 2 and steps < 2:
            continue
        per_step = d * (C_pad * HW * 4                              # x tile (f32)
                        + C_out_pad * HW * 4                        # out tile (f32)
                        + (n_taps + 2) * C_pad * HW * compute_itemsize)  # y+taps+patches
        if per_step > budget_bytes:
            continue
        best = d
    return best


# ----------------------------------------------------------------------------
# Wrapper: PyTorch semantics (NCHW in / NCHW out), training-mode BatchNorm.
# ----------------------------------------------------------------------------
def bn_relu_conv(x_nchw, gamma, beta, w_oihw, bias, *, eps=1e-5,
                 mxu_dtype=jnp.float32, out_dtype=jnp.float32):
    N, C_in, H, W = x_nchw.shape
    C_out, C_in_w, KH, KW = w_oihw.shape
    assert C_in_w == C_in
    assert KH % 2 == 1 and KW % 2 == 1, "expects 'same' odd-sized kernel"
    pad_h, pad_w = KH // 2, KW // 2
    HW = H * W
    n_taps = KH * KW
    # Roll-based taps require |dh*W + dw| < H*W (degenerate-W guard).
    assert pad_h * W + pad_w < HW, "spatial extent too small for roll-based taps"

    compute_itemsize = jnp.dtype(mxu_dtype).itemsize
    sub = (8 * 4) // compute_itemsize            # sublane packing: 8 (f32) / 16 (bf16)
    C_pad = ((C_in + sub - 1) // sub) * sub
    C_out_pad = ((C_out + 7) // 8) * 8

    # Lane-dense view (N, C_pad, H*W): NCHW flattened, channels zero-padded.
    x = x_nchw.reshape(N, C_in, HW).astype(jnp.float32)
    if C_pad != C_in:
        x = jnp.pad(x, ((0, 0), (0, C_pad - C_in), (0, 0)))

    NB = _pick_batch_block(N, C_pad, C_out_pad, HW, n_taps, compute_itemsize)
    n_blocks = N // NB

    # --- Stage 1: per-block partial sums (parallel), combined in the wrapper ---
    s_blk, ss_blk = pl.pallas_call(
        functools.partial(bn_stats_kernel, NB=NB),
        out_shape=(jax.ShapeDtypeStruct((n_blocks * C_pad, 1), jnp.float32),
                   jax.ShapeDtypeStruct((n_blocks * C_pad, 1), jnp.float32)),
        grid=(n_blocks,),
        in_specs=[pl.BlockSpec((NB, C_pad, HW), lambda b: (b, 0, 0))],
        out_specs=(pl.BlockSpec((C_pad, 1), lambda b: (b, 0)),
                   pl.BlockSpec((C_pad, 1), lambda b: (b, 0))),
        compiler_params=pltpu.CompilerParams(dimension_semantics=("parallel",)),
    )(x)

    count = jnp.float32(N * HW)
    s = jnp.sum(s_blk.reshape(n_blocks, C_pad), axis=0)
    ss = jnp.sum(ss_blk.reshape(n_blocks, C_pad), axis=0)
    mean = s / count
    var = jnp.maximum(ss / count - mean * mean, 0.0)     # biased (PyTorch train mode)

    gamma_p = jnp.pad(gamma.astype(jnp.float32), (0, C_pad - C_in))
    beta_p = jnp.pad(beta.astype(jnp.float32), (0, C_pad - C_in))
    scale = (gamma_p * jax.lax.rsqrt(var + eps)).reshape(C_pad, 1)
    shift = (beta_p - mean * gamma_p * jax.lax.rsqrt(var + eps)).reshape(C_pad, 1)

    # Conv weight -> (C_out_pad, n_taps*C_pad), tap-major / channel-minor,
    # zero-padded so padded channels/outputs contribute nothing.
    w_t = jnp.transpose(w_oihw.astype(jnp.float32), (0, 2, 3, 1))   # (O, KH, KW, I)
    w_t = jnp.pad(w_t, ((0, C_out_pad - C_out), (0, 0), (0, 0), (0, C_pad - C_in)))
    w2 = w_t.reshape(C_out_pad, n_taps * C_pad).astype(mxu_dtype)
    b2 = jnp.pad(bias.astype(jnp.float32), (0, C_out_pad - C_out)).reshape(C_out_pad, 1)

    # Precompute the tap shifts and boundary masks once (resident in VMEM).
    pos = jnp.arange(HW, dtype=jnp.int32)
    h_idx = pos // W
    w_idx = pos % W
    tap_shifts = []
    mask_rows = []
    for kh in range(KH):
        dh = kh - pad_h
        for kw in range(KW):
            dw = kw - pad_w
            tap_shifts.append(dh * W + dw)
            valid = ((h_idx + dh >= 0) & (h_idx + dh < H) &
                     (w_idx + dw >= 0) & (w_idx + dw < W))
            mask_rows.append(valid)
    masks = jnp.stack(mask_rows, axis=0).astype(mxu_dtype)          # (n_taps, HW)

    # --- Stage 2: fused normalize + ReLU + conv, pipelined over batch blocks ---
    kernel = functools.partial(
        bn_relu_conv_kernel, NB=NB, HW=HW, tap_shifts=tuple(tap_shifts),
        compute_dtype=mxu_dtype)

    out = pl.pallas_call(
        kernel,
        out_shape=jax.ShapeDtypeStruct((N, C_out_pad, HW), out_dtype),
        grid=(n_blocks,),
        in_specs=[
            pl.BlockSpec((n_taps, HW), lambda b: (0, 0)),                 # masks
            pl.BlockSpec((C_pad, 1), lambda b: (0, 0)),                   # scale
            pl.BlockSpec((C_pad, 1), lambda b: (0, 0)),                   # shift
            pl.BlockSpec((C_out_pad, n_taps * C_pad), lambda b: (0, 0)),  # weight
            pl.BlockSpec((C_out_pad, 1), lambda b: (0, 0)),               # bias
            pl.BlockSpec((NB, C_pad, HW), lambda b: (b, 0, 0)),           # x
        ],
        out_specs=pl.BlockSpec((NB, C_out_pad, HW), lambda b: (b, 0, 0)),
        compiler_params=pltpu.CompilerParams(
            dimension_semantics=("parallel",),
            vmem_limit_bytes=32 * 1024 * 1024,
        ),
    )(masks, scale, shift, w2, b2, x)

    return out[:, :C_out, :].reshape(N, C_out, H, W)


# ----------------------------------------------------------------------------
# Plain-JAX reference (PyTorch training-mode forward).
# ----------------------------------------------------------------------------
def reference_bn_relu_conv(x_nchw, gamma, beta, w_oihw, bias, *, eps=1e-5, pad=1):
    mean = jnp.mean(x_nchw, axis=(0, 2, 3), keepdims=True)
    var = jnp.mean((x_nchw - mean) ** 2, axis=(0, 2, 3), keepdims=True)
    y = (x_nchw - mean) / jnp.sqrt(var + eps)
    y = y * gamma.reshape(1, -1, 1, 1) + beta.reshape(1, -1, 1, 1)
    y = jnp.maximum(y, 0.0)
    out = jax.lax.conv_general_dilated(
        y, w_oihw, window_strides=(1, 1), padding=((pad, pad), (pad, pad)),
        dimension_numbers=("NCHW", "OIHW", "NCHW"))
    return out + bias.reshape(1, -1, 1, 1)


if __name__ == "__main__":
    # Small shapes consistent with BN_ReLU_Conv(in_channel=4, out_channel=8).
    N, C_IN, C_OUT, H, W = 2, 4, 8, 16, 16

    key = jax.random.PRNGKey(0)
    k_x, k_g, k_b, k_w, k_cb = jax.random.split(key, 5)

    x = jax.random.normal(k_x, (N, C_IN, H, W), dtype=jnp.float32)
    gamma = jax.random.uniform(k_g, (C_IN,), minval=0.5, maxval=1.5,
                               dtype=jnp.float32)                      # bn.weight
    beta = 0.1 * jax.random.normal(k_b, (C_IN,), dtype=jnp.float32)    # bn.bias
    w = 0.1 * jax.random.normal(k_w, (C_OUT, C_IN, 3, 3), dtype=jnp.float32)
    b = 0.1 * jax.random.normal(k_cb, (C_OUT,), dtype=jnp.float32)
    # TODO(synk): the original orthonormal "weight_relu_initialization" scheme
    # depends on an external `initializer` module; replaced by a deterministic
    # Gaussian init (forward semantics unchanged).

    out = bn_relu_conv(x, gamma, beta, w, b)   # f32 MXU path (strict tolerance);
                                               # pass mxu_dtype=jnp.bfloat16 on
                                               # v6e/v7x when tolerance allows.
    out = jax.block_until_ready(out)

    ref = reference_bn_relu_conv(x, gamma, beta, w, b)
    assert out.shape == (N, C_OUT, H, W)
    err = jnp.max(jnp.abs(out - ref))
    assert jnp.allclose(out, ref, atol=1e-4, rtol=1e-4), f"max err {err}"

    print("KERNEL_OK")
</pallas_src>

<mosaic_0001>
module attributes {stable_mosaic.version = 11 : i64} {
  func.func @bn_stats_kernel(%arg0: i32, %arg1: memref<1x8x256xf32, #tpu.memory_space<vmem>>, %arg2: memref<8x1xf32, #tpu.memory_space<vmem>>, %arg3: memref<8x1xf32, #tpu.memory_space<vmem>>) attributes {dimension_semantics = [#tpu.dimension_semantics<parallel>], iteration_bounds = array<i64: 2>, scalar_prefetch = 0 : i64, scratch_operands = 0 : i64, tpu.core_type = #tpu.core_type<tc>, window_params = [{transform_indices = @transform_0, window_bounds = array<i64: 1, 8, 256>}, {transform_indices = @transform_1, window_bounds = array<i64: 8, 1>}, {transform_indices = @transform_2, window_bounds = array<i64: 8, 1>}]} {
    %c0 = arith.constant 0 : index
    %c0_0 = arith.constant 0 : index
    %c0_1 = arith.constant 0 : index
    %0 = vector.load %arg1[%c0, %c0_0, %c0_1] : memref<1x8x256xf32, #tpu.memory_space<vmem>>, vector<1x8x256xf32>
    %1 = vector.shape_cast %0 : vector<1x8x256xf32> to vector<8x256xf32>
    %cst = arith.constant dense<0.000000e+00> : vector<8xf32>
    %2 = vector.multi_reduction <add>, %1, %cst [1] : vector<8x256xf32> to vector<8xf32>
    %3 = vector.shape_cast %2 : vector<8xf32> to vector<8x1xf32>
    %4 = arith.mulf %1, %1 : vector<8x256xf32>
    %cst_2 = arith.constant dense<0.000000e+00> : vector<8xf32>
    %5 = vector.multi_reduction <add>, %4, %cst_2 [1] : vector<8x256xf32> to vector<8xf32>
    %6 = vector.shape_cast %5 : vector<8xf32> to vector<8x1xf32>
    %c0_3 = arith.constant 0 : index
    %c0_4 = arith.constant 0 : index
    %7 = vector.load %arg2[%c0_3, %c0_4] : memref<8x1xf32, #tpu.memory_space<vmem>>, vector<8x1xf32>
    tpu.vector_store %arg2[%c0_3, %c0_4], %3 {strides = array<i32>} : memref<8x1xf32, #tpu.memory_space<vmem>>, vector<8x1xf32>,
    %c0_5 = arith.constant 0 : index
    %c0_6 = arith.constant 0 : index
    %8 = vector.load %arg3[%c0_5, %c0_6] : memref<8x1xf32, #tpu.memory_space<vmem>>, vector<8x1xf32>
    tpu.vector_store %arg3[%c0_5, %c0_6], %6 {strides = array<i32>} : memref<8x1xf32, #tpu.memory_space<vmem>>, vector<8x1xf32>,
    return
  }
  func.func @transform_0(%arg0: i32) -> (i32, i32, i32) {
    %c0_i32 = arith.constant 0 : i32
    %c0_i32_0 = arith.constant 0 : i32
    %c0_i32_1 = arith.constant 0 : i32
    return %arg0, %c0_i32, %c0_i32_0 : i32, i32, i32
  }
  func.func @transform_1(%arg0: i32) -> (i32, i32) {
    %c0_i32 = arith.constant 0 : i32
    %c0_i32_0 = arith.constant 0 : i32
    return %arg0, %c0_i32 : i32, i32
  }
  func.func @transform_2(%arg0: i32) -> (i32, i32) {
    %c0_i32 = arith.constant 0 : i32
    %c0_i32_0 = arith.constant 0 : i32
    return %arg0, %c0_i32 : i32, i32
  }
}

</mosaic_0001>

<bundles_post_ra>
// kernel: tpu_custom_call.1
= control target key start
LH: loop header
LB: loop body
LE: loop exit
PB: predicated region body
PF: predicated region fallthrough
CT: control target
= control target key end

     0   :  { %8 = vsyncpa [#allocation3], 0  ;;  %s512_s0 = inlined_call_operand.hbm [shape: f32[2,8,256], index: 0, kind: input, shape index: {}]   ;;  %s513_s1 = inlined_call_operand.vmem [shape: f32[16,1], index: 1, kind: output, shape index: {0}]   ;;  %s514_s2 = inlined_call_operand.vmem [shape: f32[16,1], index: 2, kind: output, shape index: {1}]  }
   0x1   :  { %10 = vsyncpa [#allocation3 + $0x1], 0  ;;  %s415_s9 = smov 0   ;;  %s417_s10 = smov 0  }
   0x2   :  { %s419_s11 = smov 0   ;;  %s421_s12 = smov 0  }
   0x3 LB: > { %s434_s13 = sadd.s32 4294967295, %s398_s12   ;;  %s437_s14 = sadd.s32 1, %s398_s12   ;;  %s398_s12 = sphi %s421_s12, %s521_s12   ;;  %s394_s11 = sphi %s419_s11, %s520_s11   ;;  %s390_s10 = sphi %s417_s10, %s519_s10   ;;  %s386_s9 = sphi %s415_s9, %s518_s9  }
   0x4   : > { %s20_s15 = ssub.s32 %s398_s12, %s437_s14  ;;  %s23_s16 = sadd.s32 1, %s394_s11 }
   0x5   : > { %p21_p0 = scmp.eq.s32.totalorder %s20_s15, 0  ;;  %p30_p1 = scmp.ne.s32.totalorder %s394_s11, %s390_s10 }
   0x6   : > { %p31_p2 = scmp.eq.s32.totalorder %s398_s12, 0  ;;  %p36_p3 = scmp.ne.s32.totalorder %s390_s10, %s386_s9 }
   0x7   : > { %s447_s17 = scalar_select %p21_p0, %s394_s11, %s23_s16  }
   0x8   : > { %p449_p4 = por %p31_p2, %p30_p1  ;;  %p37_p5 = scmp.eq.s32.totalorder %s434_s13, 0 }
   0x9   : > { %p301_p6 = scmp.lt.s32.totalorder %s398_s12, 2  ;;  %s112_s20 = sand.u32 1, %s394_s11  }
   0xa   : > { %p455_p7 = por %p37_p5, %p36_p3  ;;  %s285_s21 = sshll.u32 %s112_s20, 4 }
   0xb   : > { %s294_s22 = sshll.u32 %s398_s12, 4  ;;  %s116_s26 = scalar_lea.vmem [#allocation2], %s285_s21 }
   0xc   : > { %s121_s25 = scalar_lea.hbm %s512_s0, %s294_s22  ;;  %s125_s27 = sshll.u32 %s116_s26, 4  ;;  %s126_s27 = int_to_ptr.vmem [resolvable:$true] %s125_s27 }
   0xd   : > { %s123_s28 = sshll.u32 %s121_s25, 4  ;;  %p466_p8 = pnand %p301_p6, %p449_p4  ;;  %s124_s28 = int_to_ptr.hbm [resolvable:$true] %s123_s28 }
   0xe   : > { %p288_p9 = scmp.ge.s32.totalorder %s398_s12, 1  ;;  %p130_p10 = scmp.lt.s32.totalorder %s398_s12, 3 }
   0xf   : > { %s113_s30 = scalar_lea.sflag [#allocation3], %s112_s20  ;;  %s334_s3 = sshra.s32 %s124_s28, 4  ;;  %s335_s3 = int_to_ptr.hbm [resolvable:$true] %s334_s3 }
  0x10   : > { %s336_s4 = scalar_lea.hbm %s335_s3, 16  ;;  %p338_p12 = pneg %p466_p8 }
  0x11   : > { %p337_p11 = scmp.ne.s32.totalorder %s335_s3, %s336_s4  ;;  %s341_s7 = scalar_lea.hbm %s512_s0, 32 }
  0x12   : > { %p342_p1 = scmp.lt.s32.totalorder %s335_s3, %s512_s0  ;;  %p343_p2 = scmp.lt.s32.totalorder %s341_s7, %s336_s4 }
  0x13   : > { %p339_p13 = pnand %p338_p12, %p337_p11 }
  0x14   : > { %p344_p3 = por %p343_p2, %p342_p1 }
  0x15   : > { %p340_p0 = pneg %p339_p13 }
  0x17   : > { %p345_p4 = pnand %p344_p3, %p340_p0 }
  0x19   : > { %348 = shalt.err (!%p345_p4)
}
  0x1a   : > { %300 = dma.hbm_to_vmem [thread:$0]  (!%p466_p8), %s124_s28, 256, %s126_s27, %s113_s30  }
  0x1b   : > { %p131_p5 = pnand %p288_p9, %p130_p10 }
  0x1c   : > { %s136_s15 = sand.u32 (!%p131_p5), 1, %s390_s10  }
  0x1d   : > { %134 = sbr.rel (%p131_p5) target bundleno = 163 (0xa3), region = 24  ;;  %s289_s16 = sshll.u32 (!%p131_p5), %s136_s15, 4 }
  0x1e   : > { %s137_s18 = scalar_lea.sflag (!%p131_p5), [#allocation3], %s136_s15  ;;  %s140_s20 = scalar_lea.vmem (!%p131_p5), [#allocation2], %s289_s16 }
  0x22   : > { %381 = dma.done.wait (%p455_p7), %s137_s18, 256  }
  0x23   : > { %383 = vsyncadd (%p455_p7), %s137_s18, 4294967040  ;;  %v173_v0 = vld [vmem:[%s140_s20] sm:$0xff]  ;;  %v174_v1 = vld [vmem:[%s140_s20 + $0x8] sm:$0xff]  ;;  %p165_p6 = scmp.lt.s32.totalorder %s434_s13, 1  ;;  %vm183_vm0 = vcmask 7168  }
  0x24   : > { %v175_v2 = vadd.f32 %v174_v1, %v173_v0  ;;  %v178_v3 = vmul.f32 %v173_v0, %v173_v0  ;;  %v179_v4 = vmul.f32 %v174_v1, %v174_v1 }
  0x25   : > { %s523_s13 = smov (!%p165_p6, %s434_s13), 1 }
  0x26   : > { %176 = vadd.xlane.f32.xlu0 %v175_v2  ;;  %v180_v5 = vadd.f32 %v179_v4, %v178_v3  ;;  %s290_s12 = sshll.u32 %s523_s13, 3 }
  0x27   : > { %s168_s23 = scalar_lea.vmem %s513_s1, %s290_s12  ;;  %s172_s25 = scalar_lea.vmem %s514_s2, %s290_s12 }
  0x2e   : > { %181 = vadd.xlane.f32.xlu0 %v180_v5 }
  0x99   : > { %v177_v6 = vpop.xlane.xlu0 %176 }
  0x9a   : > { %184 = vst.msk [vmem:[%s168_s23] sm:$0xff] %vm183_vm0, %v177_v6 }
  0xa1   : > { %v182_v7 = vpop.xlane.xlu0 %181 }
  0xa2   : > { %185 = vst.msk [vmem:[%s172_s25] sm:$0xff] %vm183_vm0, %v182_v7 }
  0xa3 PF: > { %p13_p7 = scmp.ge.s32.totalorder %s437_s14, 4   ;;  %s518_s9 = smov %s390_s10 }
  0xa4   : > { %s519_s10 = smov %s394_s11  ;;  %s520_s11 = smov %s447_s17 }
  0xa5   : > { %s521_s12 = smov %s437_s14  ;;  %15 = sbr.rel (!%p13_p7) target bundleno = 3 (0x3), region = 76 }
  0xaa   :  { %219 = vsyncpa [#allocation3], 1 }
  0xab   :  { %221 = vsyncpa [#allocation3 + $0x1], 1 }

</bundles_post_ra>
